<compile_context>
chip_gen: v7x
topology: tpu7x:2x2x1
jax: 0.10.0
libtpu: 0.0.40
codegen_flags: <defaults>
</compile_context>

<pallas_src>
import functools

import jax
import jax.numpy as jnp
from jax.experimental import pallas as pl
from jax.experimental.pallas import tpu as pltpu


def _round_up(x, m):
    return (x + m - 1) // m * m


def _dqn_kernel(x_ref, w1_ref, b1_ref, w2_ref, b2_ref, w3_ref, b3_ref, q_ref):
    """Fused 3-layer MLP forward on one (TB, D0) batch tile.

    All matmuls accumulate in f32 on the MXU; bias-add + ReLU run in f32 on
    the VPU.  Weights/biases are VMEM-resident across all grid steps."""
    x = x_ref[...]

    h1 = jnp.dot(x, w1_ref[...], preferred_element_type=jnp.float32)
    h1 = jnp.maximum(h1 + b1_ref[...], 0.0)          # b1 is (1, D1) -> broadcast

    h2 = jnp.dot(h1, w2_ref[...], preferred_element_type=jnp.float32)
    h2 = jnp.maximum(h2 + b2_ref[...], 0.0)

    q = jnp.dot(h2, w3_ref[...], preferred_element_type=jnp.float32)
    q = q + b3_ref[...]

    q_ref[...] = q.astype(q_ref.dtype)                # (TB, D3): masked vst is cheap


def _pick_tile(B, block_b):
    """Batch tile size: multiple of 8, <= block_b, and >= 2 (even) grid steps
    whenever B > 8 so a v7x megacore can shard the batch axis."""
    if B <= 8:
        return B                      # single full-extent block (allowed)
    n_steps = pl.cdiv(B, block_b)
    n_steps = max(2, n_steps)
    n_steps = 2 * pl.cdiv(n_steps, 2)                 # even step count
    tb = _round_up(pl.cdiv(B, n_steps), 8)
    return min(tb, _round_up(B, 8))


@functools.partial(jax.jit, static_argnames=("block_b",))
def dqn_forward(obs, params, *, block_b=4096):
    """obs: (B, D0) float32; params: dict of w1,b1,w2,b2,w3,b3 (f32)."""
    w1, b1 = params["w1"], params["b1"]
    w2, b2 = params["w2"], params["b2"]
    w3, b3 = params["w3"], params["b3"]
    B, D0 = obs.shape
    D3 = w3.shape[1]

    TB = _pick_tile(B, block_b)
    grid_b = pl.cdiv(B, TB)           # ragged last block handled by Pallas

    # Weights/biases: full-extent blocks, constant index_map -> loaded once,
    # VMEM-resident for every grid step (~22 KB total).
    def weight_spec(a):
        return pl.BlockSpec(a.shape, lambda i: (0,) * a.ndim)

    out = pl.pallas_call(
        _dqn_kernel,
        out_shape=jax.ShapeDtypeStruct((B, D3), jnp.float32),
        grid=(grid_b,),
        in_specs=[
            pl.BlockSpec((TB, D0), lambda i: (i, 0)),   # obs tile, pipelined
            weight_spec(w1), weight_spec(b1),
            weight_spec(w2), weight_spec(b2),
            weight_spec(w3), weight_spec(b3),
        ],
        out_specs=pl.BlockSpec((TB, D3), lambda i: (i, 0)),
        compiler_params=pltpu.CompilerParams(
            # Batch tiles are independent -> megacore shards them on v7x.
            dimension_semantics=("parallel",),
        ),
    )(obs, w1, b1, w2, b2, w3, b3)

    return out


def init_dqn_params(key, dims):
    """Deterministic init mimicking torch.nn.Linear (uniform +/- 1/sqrt(fan_in)).

    Weights are stored as (in_features, out_features); biases as (1, out)."""
    params = {}
    for i, (fan_in, fan_out) in enumerate(zip(dims[:-1], dims[1:]), start=1):
        key, kw, kb = jax.random.split(key, 3)
        bound = 1.0 / jnp.sqrt(float(fan_in))
        params[f"w{i}"] = jax.random.uniform(
            kw, (fan_in, fan_out), jnp.float32, minval=-bound, maxval=bound)
        params[f"b{i}"] = jax.random.uniform(
            kb, (1, fan_out), jnp.float32, minval=-bound, maxval=bound)
    return params


def _reference(obs, params):
    h1 = jnp.maximum(obs @ params["w1"] + params["b1"], 0.0)
    h2 = jnp.maximum(h1 @ params["w2"] + params["b2"], 0.0)
    return h2 @ params["w3"] + params["b3"]


if __name__ == "__main__":
    # dims = (in_features, hidden1, hidden2, n_actions)
    dims = (16, 32, 32, 4)

    key = jax.random.PRNGKey(0)
    key, k_small, k_big = jax.random.split(key, 3)
    params = init_dqn_params(key, dims)

    # ---- Small spec-consistent case (B=2): single full-extent block.
    obs_small = jax.random.normal(k_small, (2, dims[0]), dtype=jnp.float32)
    q_small = jax.block_until_ready(dqn_forward(obs_small, params))
    assert q_small.shape == (2, dims[3])
    assert jnp.allclose(q_small, _reference(obs_small, params),
                        atol=1e-5, rtol=1e-5)

    # ---- Larger batch exercising the pipelined / parallel batch grid
    # (B=600 -> 2 tiles of 304 rows, ragged last tile handled by Pallas).
    obs_big = jax.random.normal(k_big, (600, dims[0]), dtype=jnp.float32)
    q_big = jax.block_until_ready(dqn_forward(obs_big, params))
    assert q_big.shape == (600, dims[3])
    assert jnp.allclose(q_big, _reference(obs_big, params),
                        atol=1e-5, rtol=1e-5)

    print("KERNEL_OK")
</pallas_src>

<mosaic_0001>
module attributes {stable_mosaic.version = 11 : i64} {
  func.func @_dqn_kernel(%arg0: i32, %arg1: memref<2x16xf32, #tpu.memory_space<vmem>>, %arg2: memref<16x32xf32, #tpu.memory_space<vmem>>, %arg3: memref<1x32xf32, #tpu.memory_space<vmem>>, %arg4: memref<32x32xf32, #tpu.memory_space<vmem>>, %arg5: memref<1x32xf32, #tpu.memory_space<vmem>>, %arg6: memref<32x4xf32, #tpu.memory_space<vmem>>, %arg7: memref<1x4xf32, #tpu.memory_space<vmem>>, %arg8: memref<2x4xf32, #tpu.memory_space<vmem>>) attributes {dimension_semantics = [#tpu.dimension_semantics<parallel>], iteration_bounds = array<i64: 1>, scalar_prefetch = 0 : i64, scratch_operands = 0 : i64, tpu.core_type = #tpu.core_type<tc>, window_params = [{transform_indices = @transform_0, window_bounds = array<i64: 2, 16>}, {pipeline_mode = #tpu.pipeline_mode<synchronous>, transform_indices = @transform_1, window_bounds = array<i64: 16, 32>}, {pipeline_mode = #tpu.pipeline_mode<synchronous>, transform_indices = @transform_2, window_bounds = array<i64: 1, 32>}, {pipeline_mode = #tpu.pipeline_mode<synchronous>, transform_indices = @transform_3, window_bounds = array<i64: 32, 32>}, {pipeline_mode = #tpu.pipeline_mode<synchronous>, transform_indices = @transform_4, window_bounds = array<i64: 1, 32>}, {pipeline_mode = #tpu.pipeline_mode<synchronous>, transform_indices = @transform_5, window_bounds = array<i64: 32, 4>}, {pipeline_mode = #tpu.pipeline_mode<synchronous>, transform_indices = @transform_6, window_bounds = array<i64: 1, 4>}, {transform_indices = @transform_7, window_bounds = array<i64: 2, 4>}]} {
    %c0 = arith.constant 0 : index
    %c0_0 = arith.constant 0 : index
    %0 = vector.load %arg1[%c0, %c0_0] : memref<2x16xf32, #tpu.memory_space<vmem>>, vector<2x16xf32>
    %c0_1 = arith.constant 0 : index
    %c0_2 = arith.constant 0 : index
    %1 = vector.load %arg2[%c0_1, %c0_2] : memref<16x32xf32, #tpu.memory_space<vmem>>, vector<16x32xf32>
    %cst = arith.constant dense<0.000000e+00> : vector<2x32xf32>
    %2 = tpu.matmul %0, %1, %cst {dimension_numbers = #tpu.dot_dimension_numbers<[1], [0], [0], [1], [0, 0, 1, 1], [], []>} : vector<2x16xf32>, vector<16x32xf32>, vector<2x32xf32> -> vector<2x32xf32>
    %c0_3 = arith.constant 0 : index
    %c0_4 = arith.constant 0 : index
    %3 = vector.load %arg3[%c0_3, %c0_4] : memref<1x32xf32, #tpu.memory_space<vmem>>, vector<1x32xf32>
    %4 = vector.broadcast %3 : vector<1x32xf32> to vector<2x32xf32>
    %5 = arith.addf %2, %4 : vector<2x32xf32>
    %cst_5 = arith.constant 0.000000e+00 : f32
    %6 = vector.broadcast %cst_5 : f32 to vector<2x32xf32>
    %7 = arith.maximumf %5, %6 : vector<2x32xf32>
    %c0_6 = arith.constant 0 : index
    %c0_7 = arith.constant 0 : index
    %8 = vector.load %arg4[%c0_6, %c0_7] : memref<32x32xf32, #tpu.memory_space<vmem>>, vector<32x32xf32>
    %cst_8 = arith.constant dense<0.000000e+00> : vector<2x32xf32>
    %9 = tpu.matmul %7, %8, %cst_8 {dimension_numbers = #tpu.dot_dimension_numbers<[1], [0], [0], [1], [0, 0, 1, 1], [], []>} : vector<2x32xf32>, vector<32x32xf32>, vector<2x32xf32> -> vector<2x32xf32>
    %c0_9 = arith.constant 0 : index
    %c0_10 = arith.constant 0 : index
    %10 = vector.load %arg5[%c0_9, %c0_10] : memref<1x32xf32, #tpu.memory_space<vmem>>, vector<1x32xf32>
    %11 = vector.broadcast %10 : vector<1x32xf32> to vector<2x32xf32>
    %12 = arith.addf %9, %11 : vector<2x32xf32>
    %cst_11 = arith.constant 0.000000e+00 : f32
    %13 = vector.broadcast %cst_11 : f32 to vector<2x32xf32>
    %14 = arith.maximumf %12, %13 : vector<2x32xf32>
    %c0_12 = arith.constant 0 : index
    %c0_13 = arith.constant 0 : index
    %15 = vector.load %arg6[%c0_12, %c0_13] : memref<32x4xf32, #tpu.memory_space<vmem>>, vector<32x4xf32>
    %cst_14 = arith.constant dense<0.000000e+00> : vector<2x4xf32>
    %16 = tpu.matmul %14, %15, %cst_14 {dimension_numbers = #tpu.dot_dimension_numbers<[1], [0], [0], [1], [0, 0, 1, 1], [], []>} : vector<2x32xf32>, vector<32x4xf32>, vector<2x4xf32> -> vector<2x4xf32>
    %c0_15 = arith.constant 0 : index
    %c0_16 = arith.constant 0 : index
    %17 = vector.load %arg7[%c0_15, %c0_16] : memref<1x4xf32, #tpu.memory_space<vmem>>, vector<1x4xf32>
    %18 = vector.broadcast %17 : vector<1x4xf32> to vector<2x4xf32>
    %19 = arith.addf %16, %18 : vector<2x4xf32>
    %c0_17 = arith.constant 0 : index
    %c0_18 = arith.constant 0 : index
    %20 = vector.load %arg8[%c0_17, %c0_18] : memref<2x4xf32, #tpu.memory_space<vmem>>, vector<2x4xf32>
    tpu.vector_store %arg8[%c0_17, %c0_18], %19 {strides = array<i32>} : memref<2x4xf32, #tpu.memory_space<vmem>>, vector<2x4xf32>,
    return
  }
  func.func @transform_0(%arg0: i32) -> (i32, i32) {
    %c0_i32 = arith.constant 0 : i32
    %c0_i32_0 = arith.constant 0 : i32
    return %arg0, %c0_i32 : i32, i32
  }
  func.func @transform_1(%arg0: i32) -> (i32, i32) {
    %c0_i32 = arith.constant 0 : i32
    %c0_i32_0 = arith.constant 0 : i32
    %c0_i32_1 = arith.constant 0 : i32
    return %c0_i32, %c0_i32_0 : i32, i32
  }
  func.func @transform_2(%arg0: i32) -> (i32, i32) {
    %c0_i32 = arith.constant 0 : i32
    %c0_i32_0 = arith.constant 0 : i32
    %c0_i32_1 = arith.constant 0 : i32
    return %c0_i32, %c0_i32_0 : i32, i32
  }
  func.func @transform_3(%arg0: i32) -> (i32, i32) {
    %c0_i32 = arith.constant 0 : i32
    %c0_i32_0 = arith.constant 0 : i32
    %c0_i32_1 = arith.constant 0 : i32
    return %c0_i32, %c0_i32_0 : i32, i32
  }
  func.func @transform_4(%arg0: i32) -> (i32, i32) {
    %c0_i32 = arith.constant 0 : i32
    %c0_i32_0 = arith.constant 0 : i32
    %c0_i32_1 = arith.constant 0 : i32
    return %c0_i32, %c0_i32_0 : i32, i32
  }
  func.func @transform_5(%arg0: i32) -> (i32, i32) {
    %c0_i32 = arith.constant 0 : i32
    %c0_i32_0 = arith.constant 0 : i32
    %c0_i32_1 = arith.constant 0 : i32
    return %c0_i32, %c0_i32_0 : i32, i32
  }
  func.func @transform_6(%arg0: i32) -> (i32, i32) {
    %c0_i32 = arith.constant 0 : i32
    %c0_i32_0 = arith.constant 0 : i32
    %c0_i32_1 = arith.constant 0 : i32
    return %c0_i32, %c0_i32_0 : i32, i32
  }
  func.func @transform_7(%arg0: i32) -> (i32, i32) {
    %c0_i32 = arith.constant 0 : i32
    %c0_i32_0 = arith.constant 0 : i32
    return %arg0, %c0_i32 : i32, i32
  }
}

</mosaic_0001>

<bundles_post_ra>
// kernel: dqn_forward.1
= control target key start
LH: loop header
LB: loop body
LE: loop exit
PB: predicated region body
PF: predicated region fallthrough
CT: control target
= control target key end

     0   :  { %v389_v2 = vmov 0.0|0.0   ;;  %vm390_vm0 = vmmov 0   ;;  %v391_v4 = vmov 0.0   ;;  %s490_s0 = inlined_call_operand.vmem [shape: f32[2,16], index: 0, kind: input, shape index: {}]   ;;  %s491_s1 = inlined_call_operand.vmem [shape: f32[16,32], index: 1, kind: input, shape index: {}]   ;;  %s492_s2 = inlined_call_operand.vmem [shape: f32[1,32], index: 2, kind: input, shape index: {}]   ;;  %s493_s3 = inlined_call_operand.vmem [shape: f32[32,32], index: 3, kind: input, shape index: {}]   ;;  %s494_s4 = inlined_call_operand.vmem [shape: f32[1,32], index: 4, kind: input, shape index: {}]   ;;  %s495_s5 = inlined_call_operand.vmem [shape: f32[32,4], index: 5, kind: input, shape index: {}]   ;;  %s496_s6 = inlined_call_operand.vmem [shape: f32[1,4], index: 6, kind: input, shape index: {}]   ;;  %s497_s7 = inlined_call_operand.hbm [shape: f32[2,4], index: 7, kind: output, shape index: {}]  }
   0x1   :  { %v28_v0 = vld [vmem:[%s491_s1] sm:$0xff]  ;;  %v29_v1 = vld [vmem:[%s491_s1 + $0x8] sm:$0xff]  ;;  %346 = vmatprep.subr.bf16.mxu0 %v389_v2  ;;  %321 = vmatprep.mubr.msk.f32.mxu0 %vm390_vm0, %v391_v4 }
   0x2   :  { %v347_v3 = vpack.c.bf16 %v29_v1, %v28_v0  ;;  %v112_v5 = vld [vmem:[%s493_s3] sm:$0xff]  ;;  %v113_v6 = vld [vmem:[%s493_s3 + $0x8] sm:$0xff]  ;;  %349 = vmatprep.subr.bf16.mxu1 %v389_v2  ;;  %332 = vmatprep.mubr.msk.f32.mxu1 %vm390_vm0, %v391_v4 }
   0x3   :  { %v350_v7 = vpack.c.bf16 %v113_v6, %v112_v5 }
   0x4   :  { %12 = vsyncpa [#allocation3], 0  ;;  %348 = vmatpush3.bf16.msra.mxu0 %v347_v3  ;;  %v27_v8 = vld [vmem:[%s490_s0] sm:$0x3]  ;;  %vm37_vm1 = vcmask 130048   ;;  %v114_v9 = vld [vmem:[%s493_s3 + $0x10] sm:$0xff] }
   0x5   :  { %351 = vmatpush3.bf16.msra.mxu1 %v350_v7  ;;  %355 = vmatprep.subr.bf16.mxu0 %v389_v2  ;;  %v115_v10 = vld [vmem:[%s493_s3 + $0x18] sm:$0xff]  ;;  %v198_v12 = vld [vmem:[%s495_s5] sm:$0xff]  ;;  %v199_v13 = vld [vmem:[%s495_s5 + $0x8] sm:$0xff]  ;;  %vm123_vm2 = vcmask 261120   ;;  %s392_s25 = smov [#allocation2]   ;;  %vm282_vm3 = vcmask 25600  }
   0x6   :  { %352 = vmatprep.subr.bf16.mxu1 %v389_v2  ;;  %v353_v11 = vpack.c.bf16 %v115_v10, %v114_v9  ;;  %v356_v14 = vpack.c.bf16 %v199_v13, %v198_v12  ;;  %v298_v15 = vld [vmem:[%s492_s2] ss:$0 sm:$0xff]  ;;  %v200_v20 = vld [vmem:[%s495_s5 + $0x10] sm:$0xff]  ;;  %v201_v21 = vld [vmem:[%s495_s5 + $0x18] sm:$0xff]  ;;  %s290_s26 = sshll.u32 %s392_s25, 4  ;;  %s291_s26 = int_to_ptr.vmem [resolvable:$true] %s290_s26 }
   0x7   :  { %322 = vmatmul.mubr.msk.f32.vlgmr.msra.gmra.mrb[0].mxu0 %vm37_vm1, %v27_v8  ;;  %v359_v22 = vpack.c.bf16 %v201_v21, %v200_v20  ;;  %v300_v23 = vld [vmem:[%s494_s4] ss:$0 sm:$0xff]  ;;  %s365_s5 = scalar_lea.vmem %s291_s26, 32  ;;  %p370_p1 = scmp.lt.s32.totalorder %s291_s26, %s291_s26 }
   0x8   :  { %343 = vmatprep.mubr.msk.f32.mxu0 %vm390_vm0, %v391_v4  ;;  %357 = vmatpush3.bf16.msra.mxu0 %v356_v14  ;;  %v302_v28 = vld [vmem:[%s496_s6] ss:$0 sm:$0xff]  ;;  %p366_p0 = scmp.ne.s32.totalorder %s291_s26, %s365_s5  ;;  %p371_p2 = scmp.lt.s32.totalorder %s365_s5, %s365_s5 }
   0x9   :  { %354 = vmatpush3.bf16.msra.mxu1 %v353_v11  ;;  %358 = vmatprep.subr.bf16.mxu0 %v389_v2 }
   0xa   :  { %p372_p3 = por %p371_p2, %p370_p1 }
   0xc   :  { %360 = vmatpush3.bf16.msra.mxu0 %v359_v22  ;;  %p373_p4 = pnand %p372_p3, %p366_p0 }
  0xda   :  { %v107_v16 = vpop.f32.mrb[0].mxu0 }
  0xdb   :  { %v108_v17 = vadd.f32 %v298_v15, %v107_v16  ;;  %v323_v18 = vpop.f32.mrb[1].mxu0 }
  0xdd   :  { %v111_v19 = vmax.f32 %v108_v17, 0.0 }
  0xdf   :  { %333 = vmatmul.mubr.msk.f32.vlgmr.msra.gmra.mrb[0].mxu1 %vm123_vm2, %v111_v19 }
 0x1b2   :  { %v193_v24 = vpop.f32.mrb[0].mxu1 }
 0x1b3   :  { %v194_v25 = vadd.f32 %v300_v23, %v193_v24  ;;  %v334_v26 = vpop.f32.mrb[1].mxu1 }
 0x1b5   :  { %v197_v27 = vmax.f32 %v194_v25, 0.0 }
 0x1b7   :  { %344 = vmatmul.mubr.msk.f32.vlgmr.msra.gmra.mrb[2].mxu0 %vm123_vm2, %v197_v27 }
 0x28a   :  { %v278_v29 = vpop.f32.mrb[2].mxu0 }
 0x28b   :  { %v279_v30 = vadd.f32 %v302_v28, %v278_v29  ;;  %v345_v31 = vpop.f32.mrb[3].mxu0 }
 0x28d   :  { %283 = vst.msk [vmem:[#allocation2] sm:$0x3] %vm282_vm3, %v279_v30 }
 0x28e   :  { %376 = shalt.err (!%p373_p4)
}
 0x28f   :  { %s377_s28 = scalar_lea.hbm %s497_s7, 32 }
 0x290   :  { %p378_p5 = scmp.ne.s32.totalorder %s497_s7, %s377_s28  ;;  %p381_p6 = scmp.lt.u32.totalorder %s377_s28, %s497_s7 }
 0x292   :  { %p383_p7 = pnand %p381_p6, %p378_p5 }
 0x294   :  { %386 = shalt.err (!%p383_p7)
}
 0x295   :  { %293 = dma.vmem_to_hbm [thread:$0]  %s291_s26, 32, %s497_s7, [#allocation3]  }
 0x296   :  { %387 = dma.done.wait [#allocation3], 32  }
 0x297   :  { %388 = vsyncadd [#allocation3], 4294967264 }
 0x298   :  { %297 = vsyncpa [#allocation3], 1 }

</bundles_post_ra>
